<compile_context>
chip_gen: v6e
topology: v6e:2x2x1
jax: 0.10.0
libtpu: 0.0.40
codegen_flags: <defaults>
</compile_context>

<pallas_src>
import jax
import jax.numpy as jnp
from jax.experimental import pallas as pl
from jax.experimental.pallas import tpu as pltpu

_LANE = 128
_VMEM_LIMIT_BYTES = 48 << 20  # > v5e's 16 MiB scoped default, < v7x's 64 MiB physical


def _mul_add_kernel(x_ref, o_ref):
    # Elementwise hot path (VPU). Python scalars are weakly typed, so bf16
    # inputs stay bf16 (no accidental f32 promotion).
    o_ref[...] = x_ref[...] * 2 + 1


def _pick_block_bytes():
    """~8 MiB blocks on v7x (only 64 MiB VMEM but 3.2 TB/s HBM, so per-step
    overhead dominates), ~4 MiB on v5e/v6e (128 MiB VMEM, slower HBM)."""
    try:
        info = pltpu.get_tpu_info()
        vmem = getattr(info, "vmem_capacity_bytes", 128 << 20)
    except Exception:
        vmem = 128 << 20
    return (8 << 20) if vmem <= (64 << 20) else (4 << 20)


def _ceil_to(x, m):
    return -(-x // m) * m


def pt_module_forward(x, *, donate_input=False):
    """Pallas equivalent of PtModule.forward (x * 2 + 1, per batch element)."""
    orig_shape = x.shape
    dtype = x.dtype
    itemsize = jnp.dtype(dtype).itemsize
    n = 1
    for d in orig_shape:
        n *= d

    # Dtype-aware minimum sublane tile: 8 rows (f32), 16 (bf16/f16), 32 (int8/fp8).
    sublane = max(8, (8 * 4) // itemsize)

    # Rows of 128 lanes holding the flattened tensor. Pad ONLY up to a multiple
    # of 128 (at most 127 elements), never up to a tile multiple.
    rows = -(-n // _LANE)
    n_rows_elems = rows * _LANE

    x_flat = x.reshape(-1)
    if n_rows_elems != n:
        x_flat = jnp.pad(x_flat, (0, n_rows_elems - n))
    x2d = x_flat.reshape(rows, _LANE)

    # Rows per tile: ~block_bytes per block buffer, multiple of the dtype's
    # sublane packing, capped at what the whole (sublane-rounded) input needs.
    block_bytes = _pick_block_bytes()
    rows_ceil = _ceil_to(rows, sublane)
    desired_rows = max(sublane, (block_bytes // (_LANE * itemsize)) // sublane * sublane)
    tile_rows = min(desired_rows, rows_ceil)

    # v7x megacore: make sure the "parallel" grid axis has >= 2 steps for
    # medium inputs (one extra ~0.35 us step is noise at >= 1 MiB of data).
    total_bytes = rows * _LANE * itemsize
    if tile_rows >= rows_ceil and rows_ceil >= 2 * sublane and total_bytes >= (1 << 20):
        tile_rows = _ceil_to(_ceil_to(rows, 2) // 2, sublane)

    grid = (pl.cdiv(rows, tile_rows),)  # ragged final block is masked by Pallas

    out2d = pl.pallas_call(
        _mul_add_kernel,
        out_shape=jax.ShapeDtypeStruct((rows, _LANE), dtype),
        grid=grid,
        in_specs=[pl.BlockSpec((tile_rows, _LANE), lambda i: (i, 0))],
        out_specs=pl.BlockSpec((tile_rows, _LANE), lambda i: (i, 0)),
        compiler_params=pltpu.CompilerParams(
            dimension_semantics=("parallel",),
            vmem_limit_bytes=_VMEM_LIMIT_BYTES,
        ),
        cost_estimate=pl.CostEstimate(
            flops=2 * n,
            transcendentals=0,
            bytes_accessed=2 * n * itemsize,
        ),
        input_output_aliases=({0: 0} if donate_input else {}),
    )(x2d)

    out_flat = out2d.reshape(-1)
    if n_rows_elems != n:
        out_flat = out_flat[:n]
    return out_flat.reshape(orig_shape)


if __name__ == "__main__":
    key = jax.random.PRNGKey(0)

    # Main case: matches the module's expected batched input.
    x = jax.random.normal(key, (2, 4, 16, 16), dtype=jnp.float32)
    out = jax.block_until_ready(pt_module_forward(x))
    ref = x * 2.0 + 1.0
    assert out.shape == x.shape
    assert out.dtype == x.dtype
    assert jnp.allclose(out, ref, atol=1e-6), "mismatch vs reference (main)"

    # Ragged case: element count not a multiple of 128 exercises the
    # minimal-pad + masked-final-block path.
    x2 = jax.random.normal(jax.random.PRNGKey(0), (3, 5, 7), dtype=jnp.float32)
    out2 = jax.block_until_ready(pt_module_forward(x2))
    ref2 = x2 * 2.0 + 1.0
    assert out2.shape == x2.shape
    assert jnp.allclose(out2, ref2, atol=1e-6), "mismatch vs reference (ragged)"

    print("KERNEL_OK")
</pallas_src>

<mosaic_0001>
module attributes {stable_mosaic.version = 11 : i64} {
  func.func @_mul_add_kernel(%arg0: i32, %arg1: memref<16x128xf32, #tpu.memory_space<vmem>>, %arg2: memref<16x128xf32, #tpu.memory_space<vmem>>) attributes {dimension_semantics = [#tpu.dimension_semantics<parallel>], iteration_bounds = array<i64: 1>, scalar_prefetch = 0 : i64, scratch_operands = 0 : i64, tpu.core_type = #tpu.core_type<tc>, window_params = [{transform_indices = @transform_0, window_bounds = array<i64: 16, 128>}, {transform_indices = @transform_1, window_bounds = array<i64: 16, 128>}]} {
    %c0 = arith.constant 0 : index
    %c0_0 = arith.constant 0 : index
    %0 = vector.load %arg1[%c0, %c0_0] : memref<16x128xf32, #tpu.memory_space<vmem>>, vector<16x128xf32>
    %cst = arith.constant 2.000000e+00 : f32
    %1 = vector.broadcast %cst : f32 to vector<16x128xf32>
    %2 = arith.mulf %0, %1 : vector<16x128xf32>
    %cst_1 = arith.constant 1.000000e+00 : f32
    %3 = vector.broadcast %cst_1 : f32 to vector<16x128xf32>
    %4 = arith.addf %2, %3 : vector<16x128xf32>
    %c0_2 = arith.constant 0 : index
    %c0_3 = arith.constant 0 : index
    %5 = vector.load %arg2[%c0_2, %c0_3] : memref<16x128xf32, #tpu.memory_space<vmem>>, vector<16x128xf32>
    tpu.vector_store %arg2[%c0_2, %c0_3], %4 {strides = array<i32>} : memref<16x128xf32, #tpu.memory_space<vmem>>, vector<16x128xf32>,
    return
  }
  func.func @transform_0(%arg0: i32) -> (i32, i32) {
    %c0_i32 = arith.constant 0 : i32
    %c0_i32_0 = arith.constant 0 : i32
    return %arg0, %c0_i32 : i32, i32
  }
  func.func @transform_1(%arg0: i32) -> (i32, i32) {
    %c0_i32 = arith.constant 0 : i32
    %c0_i32_0 = arith.constant 0 : i32
    return %arg0, %c0_i32 : i32, i32
  }
}

</mosaic_0001>

<bundles_post_ra>
// kernel: tpu_custom_call.1
= control target key start
LH: loop header
LB: loop body
LE: loop exit
PB: predicated region body
PF: predicated region fallthrough
CT: control target
= control target key end

     0   :  { %6 = vsyncpa [#allocation3], 0  ;;  %s116_s0 = inlined_call_operand.hbm [shape: f32[16,128], index: 0, kind: input, shape index: {}]   ;;  %s117_s1 = inlined_call_operand.hbm [shape: f32[16,128], index: 1, kind: output, shape index: {}]  }
   0x1   :  { %7 = vsyncpa [#allocation4], 0  ;;  %s96_s6 = smov [#allocation2]  }
   0x2   :  { %s13_s7 = sshll.u32 %s96_s6, 4  ;;  %s14_s7 = int_to_ptr.vmem [resolvable:$true] %s13_s7 }
   0x3   :  { %s60_s8 = scalar_lea.vmem %s14_s7, 256  ;;  %p65_p1 = scmp.lt.s32.totalorder %s14_s7, %s14_s7 }
   0x4   :  { %p61_p0 = scmp.ne.s32.totalorder %s14_s7, %s60_s8  ;;  %p66_p2 = scmp.lt.s32.totalorder %s60_s8, %s60_s8 }
   0x6   :  { %p67_p3 = por %p66_p2, %p65_p1 }
   0x8   :  { %p68_p4 = pnand %p67_p3, %p61_p0 }
   0xa   :  { %71 = shalt.err (!%p68_p4)
}
   0xb   :  { %s97_s9 = smov 128   ;;  %s98_s10 = smov 8  }
   0xc   :  { %19 = dma.hbm_to_vmem [thread:$0]  %s116_s0, 256, %s14_s7, [#allocation3], %s97_s9, %s97_s9, %s98_s10  }
   0xd   :  { %92 = dma.done.wait [#allocation3], 256  }
   0xe   :  { %93 = vsyncadd [#allocation3], 4294967040  ;;  %v23_v0 = vld [vmem:[#allocation2] sm:$0xff]  ;;  %v24_v1 = vld [vmem:[#allocation2 + $0x8] sm:$0xff]  ;;  %s99_s13 = smov [#allocation5]  }
   0xf   :  { %s36_s14 = sshll.u32 %s99_s13, 4  ;;  %v25_v2 = vmul.f32 2.0, %v23_v0  ;;  %v26_v3 = vmul.f32 2.0, %v24_v1  ;;  %s37_s14 = int_to_ptr.vmem [resolvable:$true] %s36_s14 }
  0x10   :  { %s72_s15 = scalar_lea.vmem %s37_s14, 256  ;;  %p77_p6 = scmp.lt.s32.totalorder %s37_s14, %s37_s14 }
  0x11   :  { %v27_v4 = vadd.f32 1.0, %v25_v2  ;;  %v28_v5 = vadd.f32 1.0, %v26_v3  ;;  %p73_p5 = scmp.ne.s32.totalorder %s37_s14, %s72_s15  ;;  %p78_p7 = scmp.lt.s32.totalorder %s72_s15, %s72_s15 }
  0x13   :  { %29 = vst [vmem:[#allocation5] sm:$0xff] %v27_v4  ;;  %30 = vst [vmem:[#allocation5 + $0x8] sm:$0xff] %v28_v5  ;;  %p79_p8 = por %p78_p7, %p77_p6 }
  0x15   :  { %p80_p9 = pnand %p79_p8, %p73_p5 }
  0x17   :  { %83 = shalt.err (!%p80_p9)
}
  0x18   :  { %42 = dma.vmem_to_hbm [thread:$0]  %s37_s14, 256, %s117_s1, [#allocation4], %s97_s9, %s97_s9, %s98_s10  }
  0x19   :  { %94 = dma.done.wait [#allocation4], 256  }
  0x1a   :  { %95 = vsyncadd [#allocation4], 4294967040 }
  0x1b   :  { %46 = vsyncpa [#allocation3], 1 }
  0x1c   :  { %47 = vsyncpa [#allocation4], 1 }

</bundles_post_ra>
